<compile_context>
chip_gen: v7x
topology: tpu7x:2x2x1
jax: 0.10.0
libtpu: 0.0.40
codegen_flags: <defaults>
</compile_context>

<pallas_src>
import functools

import jax
import jax.numpy as jnp
from jax import lax
from jax.experimental import pallas as pl
from jax.experimental.pallas import tpu as pltpu


def _heatmap_attn_kernel(*refs, scale, use_rope):
    if use_rope:
        (hs_ref, hm_ref, cos_ref, sin_ref, rot_ref,
         wq_ref, wk_ref, wv_ref, wo_ref, out_ref) = refs
    else:
        (hs_ref, hm_ref, wq_ref, wk_ref, wv_ref, wo_ref, out_ref) = refs

    h = pl.program_id(0)

    # The output block's index_map is constant over the head axis, so it stays
    # resident in VMEM for the whole grid and doubles as the f32 accumulator.
    @pl.when(h == 0)
    def _init():
        out_ref[...] = jnp.zeros_like(out_ref)

    hs = hs_ref[...]                                   # (S, H), native dtype

    # Per-head projections: weights arrive lane-dense, no in-kernel transpose.
    k = jnp.dot(hs, wk_ref[0], preferred_element_type=jnp.float32)   # (S, hd)
    v = jnp.dot(hs, wv_ref[0], preferred_element_type=jnp.float32)   # (S, hd)
    # q_proj has in_features == 1 -> broadcasted scalar product on the VPU.
    q = hm_ref[...].astype(jnp.float32) * wq_ref[0].astype(jnp.float32)  # (S, hd)

    if use_rope:
        cos = cos_ref[...]                             # (S, hd) f32
        sin = sin_ref[...]                             # (S, hd) f32
        rot = rot_ref[...]                             # (hd, hd) f32, x@rot == rotate_half(x)
        q = q * cos + jnp.dot(q, rot, preferred_element_type=jnp.float32) * sin
        k = k * cos + jnp.dot(k, rot, preferred_element_type=jnp.float32) * sin

    # Scores: contract the last dims of q and k directly (MXU-native, no k.T).
    s = lax.dot_general(q, k, (((1,), (1,)), ((), ())),
                        preferred_element_type=jnp.float32) * scale   # (S, S)

    m = jnp.max(s, axis=-1, keepdims=True)
    e = jnp.exp(s - m)
    p = e * pl.reciprocal(jnp.sum(e, axis=-1, keepdims=True), approx=True)

    ctx = jnp.dot(p, v, preferred_element_type=jnp.float32)           # (S, hd)

    # This head's slice of the output projection, accumulated into the output.
    out_ref[...] += jnp.dot(ctx, wo_ref[0], preferred_element_type=jnp.float32)


def heatmap_attention_head(hidden_states, heatmap, params, num_heads=1,
                           position_embeddings=None):
    """JAX/Pallas equivalent of Qwen2_5VisionHeatmapAttentionHead.forward."""
    S, H = hidden_states.shape
    assert H % num_heads == 0
    hd = H // num_heads
    scale = float(hd) ** -0.5
    use_rope = position_embeddings is not None

    wq, wk, wv, wo = params["wq"], params["wk"], params["wv"], params["wo"]

    # Head-major, pre-transposed (lane-dense) weight layouts.  nn.Linear weight
    # convention is (out_features, in_features).
    wq_h = wq.reshape(num_heads, hd, 1).transpose(0, 2, 1)     # (nh, 1, hd)
    wkT_h = wk.reshape(num_heads, hd, H).transpose(0, 2, 1)    # (nh, H, hd)
    wvT_h = wv.reshape(num_heads, hd, H).transpose(0, 2, 1)    # (nh, H, hd)
    woT_h = wo.T.reshape(num_heads, hd, H)                     # (nh, hd, H)

    operands = [hidden_states, heatmap]
    in_specs = [
        pl.BlockSpec((S, H), lambda h: (0, 0)),                # hidden_states
        pl.BlockSpec((S, 1), lambda h: (0, 0)),                # heatmap
    ]

    if use_rope:
        assert hd % 2 == 0
        half = hd // 2
        cos, sin = position_embeddings
        cos = jnp.asarray(cos, jnp.float32).reshape(S, hd)
        sin = jnp.asarray(sin, jnp.float32).reshape(S, hd)
        eye = jnp.eye(half, dtype=jnp.float32)
        zeros = jnp.zeros((half, half), jnp.float32)
        # rotate_half(x) == x @ rot, with rot = [[0, I], [-I, 0]]
        rot = jnp.block([[zeros, eye], [-eye, zeros]])
        operands += [cos, sin, rot]
        in_specs += [
            pl.BlockSpec((S, hd), lambda h: (0, 0)),           # cos
            pl.BlockSpec((S, hd), lambda h: (0, 0)),           # sin
            pl.BlockSpec((hd, hd), lambda h: (0, 0)),          # rotate-half matrix
        ]

    operands += [wq_h, wkT_h, wvT_h, woT_h]
    in_specs += [
        pl.BlockSpec((1, 1, hd), lambda h: (h, 0, 0)),         # Wq (head h)
        pl.BlockSpec((1, H, hd), lambda h: (h, 0, 0)),         # Wk^T (head h)
        pl.BlockSpec((1, H, hd), lambda h: (h, 0, 0)),         # Wv^T (head h)
        pl.BlockSpec((1, hd, H), lambda h: (h, 0, 0)),         # Wo^T (head h)
    ]

    # Size the scoped-VMEM limit to the real resident set (+ headroom for the
    # (S, S) score matrix and f32 intermediates); clamp to a safe range.
    est = sum(int(a.size) * a.dtype.itemsize for a in operands) * 2   # double-buffered
    est += S * H * 4 * 2                        # resident f32 output block
    est += S * S * 4 * 2                        # scores + exp
    est += 8 * S * hd * 4                       # q/k/v/ctx/rope temps
    vmem_limit = int(min(max(est * 2, 16 * 2 ** 20), 64 * 2 ** 20))

    kernel = functools.partial(_heatmap_attn_kernel, scale=scale, use_rope=use_rope)

    return pl.pallas_call(
        kernel,
        out_shape=jax.ShapeDtypeStruct((S, H), jnp.float32),
        grid_spec=pltpu.PrefetchScalarGridSpec(
            num_scalar_prefetch=0,
            grid=(num_heads,),
            in_specs=in_specs,
            out_specs=pl.BlockSpec((S, H), lambda h: (0, 0)),
        ),
        compiler_params=pltpu.CompilerParams(
            # Heads accumulate into the shared output block -> must stay
            # "arbitrary" (marking it "parallel" would be a data race).
            dimension_semantics=("arbitrary",),
            vmem_limit_bytes=vmem_limit,
        ),
    )(*operands)


# ---------------- pure-JAX reference (mirrors the PyTorch forward) -----------
def reference(hidden_states, heatmap, params, num_heads, position_embeddings=None):
    S, H = hidden_states.shape
    hd = H // num_heads
    hi = jax.lax.Precision.HIGHEST
    k = jnp.dot(hidden_states, params["wk"].T, precision=hi)
    v = jnp.dot(hidden_states, params["wv"].T, precision=hi)
    q = jnp.dot(heatmap, params["wq"].T, precision=hi)
    q = q.reshape(S, num_heads, hd)
    k = k.reshape(S, num_heads, hd)
    v = v.reshape(S, num_heads, hd)
    if position_embeddings is not None:
        cos, sin = position_embeddings
        cos = cos[:, None, :]
        sin = sin[:, None, :]

        def rh(x):
            x1, x2 = jnp.split(x, 2, axis=-1)
            return jnp.concatenate([-x2, x1], axis=-1)

        q = q * cos + rh(q) * sin
        k = k * cos + rh(k) * sin
    q, k, v = (t.transpose(1, 0, 2) for t in (q, k, v))
    w = jnp.einsum("hqd,hkd->hqk", q, k, precision=hi) * (hd ** -0.5)
    w = jax.nn.softmax(w, axis=-1)
    o = jnp.einsum("hqk,hkd->hqd", w, v, precision=hi)
    o = o.transpose(1, 0, 2).reshape(S, H)
    return jnp.dot(o, params["wo"].T, precision=hi)


if __name__ == "__main__":
    # small, module-consistent shapes
    SEQ = 8
    HIDDEN = 32
    NUM_HEADS = 2
    HEAD_DIM = HIDDEN // NUM_HEADS

    key = jax.random.PRNGKey(0)
    k_hs, k_hm, k_q, k_k, k_v, k_o, k_pos = jax.random.split(key, 7)

    hidden_states = jax.random.normal(k_hs, (SEQ, HIDDEN), jnp.float32)
    heatmap = jax.random.normal(k_hm, (SEQ, 1), jnp.float32)

    # deterministic synthetic parameters (nn.Linear weight convention: (out, in))
    params = {
        "wq": jax.random.normal(k_q, (HIDDEN, 1), jnp.float32) * 0.5,
        "wk": jax.random.normal(k_k, (HIDDEN, HIDDEN), jnp.float32) / jnp.sqrt(HIDDEN),
        "wv": jax.random.normal(k_v, (HIDDEN, HIDDEN), jnp.float32) / jnp.sqrt(HIDDEN),
        "wo": jax.random.normal(k_o, (HIDDEN, HIDDEN), jnp.float32) / jnp.sqrt(HIDDEN),
    }

    # rotary position embeddings, one (cos, sin) pair per patch, per head-dim
    angles = jax.random.uniform(k_pos, (SEQ, HEAD_DIM), jnp.float32, 0.0, 3.14)
    pos_emb = (jnp.cos(angles), jnp.sin(angles))

    # --- run kernel: with RoPE and without (position_embeddings=None) ---
    out_rope = heatmap_attention_head(hidden_states, heatmap, params,
                                      num_heads=NUM_HEADS,
                                      position_embeddings=pos_emb)
    out_none = heatmap_attention_head(hidden_states, heatmap, params,
                                      num_heads=NUM_HEADS,
                                      position_embeddings=None)
    jax.block_until_ready((out_rope, out_none))

    ref_rope = reference(hidden_states, heatmap, params, NUM_HEADS, pos_emb)
    ref_none = reference(hidden_states, heatmap, params, NUM_HEADS, None)

    assert out_rope.shape == (SEQ, HIDDEN) and out_none.shape == (SEQ, HIDDEN)
    # Loose tolerances: default-precision MXU f32 matmuls + approx reciprocal
    # in the softmax vs. the Precision.HIGHEST reference.
    assert jnp.allclose(out_rope, ref_rope, rtol=2e-2, atol=1e-2), "RoPE path mismatch"
    assert jnp.allclose(out_none, ref_none, rtol=2e-2, atol=1e-2), "no-RoPE path mismatch"

    print("KERNEL_OK")
</pallas_src>

<mosaic_0001>
module attributes {stable_mosaic.version = 11 : i64} {
  func.func @_heatmap_attn_kernel(%arg0: i32, %arg1: memref<8x32xf32, #tpu.memory_space<vmem>>, %arg2: memref<8x1xf32, #tpu.memory_space<vmem>>, %arg3: memref<8x16xf32, #tpu.memory_space<vmem>>, %arg4: memref<8x16xf32, #tpu.memory_space<vmem>>, %arg5: memref<16x16xf32, #tpu.memory_space<vmem>>, %arg6: memref<1x1x16xf32, #tpu.memory_space<vmem>>, %arg7: memref<1x32x16xf32, #tpu.memory_space<vmem>>, %arg8: memref<1x32x16xf32, #tpu.memory_space<vmem>>, %arg9: memref<1x16x32xf32, #tpu.memory_space<vmem>>, %arg10: memref<8x32xf32, #tpu.memory_space<vmem>>) attributes {dimension_semantics = [#tpu.dimension_semantics<arbitrary>], iteration_bounds = array<i64: 2>, scalar_prefetch = 0 : i64, scratch_operands = 0 : i64, tpu.core_type = #tpu.core_type<tc>, window_params = [{pipeline_mode = #tpu.pipeline_mode<synchronous>, transform_indices = @transform_0, window_bounds = array<i64: 8, 32>}, {pipeline_mode = #tpu.pipeline_mode<synchronous>, transform_indices = @transform_1, window_bounds = array<i64: 8, 1>}, {pipeline_mode = #tpu.pipeline_mode<synchronous>, transform_indices = @transform_2, window_bounds = array<i64: 8, 16>}, {pipeline_mode = #tpu.pipeline_mode<synchronous>, transform_indices = @transform_3, window_bounds = array<i64: 8, 16>}, {pipeline_mode = #tpu.pipeline_mode<synchronous>, transform_indices = @transform_4, window_bounds = array<i64: 16, 16>}, {transform_indices = @transform_5, window_bounds = array<i64: 1, 1, 16>}, {transform_indices = @transform_6, window_bounds = array<i64: 1, 32, 16>}, {transform_indices = @transform_7, window_bounds = array<i64: 1, 32, 16>}, {transform_indices = @transform_8, window_bounds = array<i64: 1, 16, 32>}, {pipeline_mode = #tpu.pipeline_mode<synchronous>, transform_indices = @transform_9, window_bounds = array<i64: 8, 32>}]} {
    %c0_i32 = arith.constant 0 : i32
    %0 = arith.cmpi eq, %arg0, %c0_i32 : i32
    %1 = arith.extui %0 : i1 to i32
    %c0_i32_0 = arith.constant 0 : i32
    %2 = arith.cmpi ne, %1, %c0_i32_0 : i32
    scf.if %2 {
      %cst_35 = arith.constant 0.000000e+00 : f32
      %47 = vector.broadcast %cst_35 : f32 to vector<8x32xf32>
      %c0_36 = arith.constant 0 : index
      %c0_37 = arith.constant 0 : index
      %48 = vector.load %arg10[%c0_36, %c0_37] : memref<8x32xf32, #tpu.memory_space<vmem>>, vector<8x32xf32>
      tpu.vector_store %arg10[%c0_36, %c0_37], %47 {strides = array<i32>} : memref<8x32xf32, #tpu.memory_space<vmem>>, vector<8x32xf32>,
    } else {
    }
    %c0 = arith.constant 0 : index
    %c0_1 = arith.constant 0 : index
    %3 = vector.load %arg1[%c0, %c0_1] : memref<8x32xf32, #tpu.memory_space<vmem>>, vector<8x32xf32>
    %c0_2 = arith.constant 0 : index
    %c0_3 = arith.constant 0 : index
    %c0_4 = arith.constant 0 : index
    %4 = vector.load %arg7[%c0_2, %c0_3, %c0_4] : memref<1x32x16xf32, #tpu.memory_space<vmem>>, vector<1x32x16xf32>
    %5 = vector.shape_cast %4 : vector<1x32x16xf32> to vector<32x16xf32>
    %cst = arith.constant dense<0.000000e+00> : vector<8x16xf32>
    %6 = tpu.matmul %3, %5, %cst {dimension_numbers = #tpu.dot_dimension_numbers<[1], [0], [0], [1], [0, 0, 1, 1], [], []>} : vector<8x32xf32>, vector<32x16xf32>, vector<8x16xf32> -> vector<8x16xf32>
    %c0_5 = arith.constant 0 : index
    %c0_6 = arith.constant 0 : index
    %c0_7 = arith.constant 0 : index
    %7 = vector.load %arg8[%c0_5, %c0_6, %c0_7] : memref<1x32x16xf32, #tpu.memory_space<vmem>>, vector<1x32x16xf32>
    %8 = vector.shape_cast %7 : vector<1x32x16xf32> to vector<32x16xf32>
    %cst_8 = arith.constant dense<0.000000e+00> : vector<8x16xf32>
    %9 = tpu.matmul %3, %8, %cst_8 {dimension_numbers = #tpu.dot_dimension_numbers<[1], [0], [0], [1], [0, 0, 1, 1], [], []>} : vector<8x32xf32>, vector<32x16xf32>, vector<8x16xf32> -> vector<8x16xf32>
    %c0_9 = arith.constant 0 : index
    %c0_10 = arith.constant 0 : index
    %10 = vector.load %arg2[%c0_9, %c0_10] : memref<8x1xf32, #tpu.memory_space<vmem>>, vector<8x1xf32>
    %c0_11 = arith.constant 0 : index
    %c0_12 = arith.constant 0 : index
    %c0_13 = arith.constant 0 : index
    %11 = vector.load %arg6[%c0_11, %c0_12, %c0_13] : memref<1x1x16xf32, #tpu.memory_space<vmem>>, vector<1x1x16xf32>
    %12 = vector.shape_cast %11 : vector<1x1x16xf32> to vector<1x16xf32>
    %13 = vector.broadcast %10 : vector<8x1xf32> to vector<8x16xf32>
    %14 = vector.broadcast %12 : vector<1x16xf32> to vector<8x16xf32>
    %15 = arith.mulf %13, %14 : vector<8x16xf32>
    %c0_14 = arith.constant 0 : index
    %c0_15 = arith.constant 0 : index
    %16 = vector.load %arg3[%c0_14, %c0_15] : memref<8x16xf32, #tpu.memory_space<vmem>>, vector<8x16xf32>
    %c0_16 = arith.constant 0 : index
    %c0_17 = arith.constant 0 : index
    %17 = vector.load %arg4[%c0_16, %c0_17] : memref<8x16xf32, #tpu.memory_space<vmem>>, vector<8x16xf32>
    %c0_18 = arith.constant 0 : index
    %c0_19 = arith.constant 0 : index
    %18 = vector.load %arg5[%c0_18, %c0_19] : memref<16x16xf32, #tpu.memory_space<vmem>>, vector<16x16xf32>
    %19 = arith.mulf %15, %16 : vector<8x16xf32>
    %cst_20 = arith.constant dense<0.000000e+00> : vector<8x16xf32>
    %20 = tpu.matmul %15, %18, %cst_20 {dimension_numbers = #tpu.dot_dimension_numbers<[1], [0], [0], [1], [0, 0, 1, 1], [], []>} : vector<8x16xf32>, vector<16x16xf32>, vector<8x16xf32> -> vector<8x16xf32>
    %21 = arith.mulf %20, %17 : vector<8x16xf32>
    %22 = arith.addf %19, %21 : vector<8x16xf32>
    %23 = arith.mulf %6, %16 : vector<8x16xf32>
    %cst_21 = arith.constant dense<0.000000e+00> : vector<8x16xf32>
    %24 = tpu.matmul %6, %18, %cst_21 {dimension_numbers = #tpu.dot_dimension_numbers<[1], [0], [0], [1], [0, 0, 1, 1], [], []>} : vector<8x16xf32>, vector<16x16xf32>, vector<8x16xf32> -> vector<8x16xf32>
    %25 = arith.mulf %24, %17 : vector<8x16xf32>
    %26 = arith.addf %23, %25 : vector<8x16xf32>
    %cst_22 = arith.constant dense<0.000000e+00> : vector<8x8xf32>
    %27 = tpu.matmul %22, %26, %cst_22 {dimension_numbers = #tpu.dot_dimension_numbers<[1], [1], [0], [0], [0, 0, 1, 0], [], []>} : vector<8x16xf32>, vector<8x16xf32>, vector<8x8xf32> -> vector<8x8xf32>
    %cst_23 = arith.constant 2.500000e-01 : f32
    %28 = vector.broadcast %cst_23 : f32 to vector<8x8xf32>
    %29 = arith.mulf %27, %28 : vector<8x8xf32>
    %cst_24 = arith.constant dense<0xFF800000> : vector<8xf32>
    %30 = vector.multi_reduction <maximumf>, %29, %cst_24 [1] : vector<8x8xf32> to vector<8xf32>
    %31 = vector.shape_cast %30 : vector<8xf32> to vector<8x1xf32>
    %32 = vector.broadcast %31 : vector<8x1xf32> to vector<8x8xf32>
    %33 = arith.subf %29, %32 : vector<8x8xf32>
    %34 = math.exp %33 : vector<8x8xf32>
    %cst_25 = arith.constant dense<0.000000e+00> : vector<8xf32>
    %35 = vector.multi_reduction <add>, %34, %cst_25 [1] : vector<8x8xf32> to vector<8xf32>
    %36 = vector.shape_cast %35 : vector<8xf32> to vector<8x1xf32>
    %37 = tpu.reciprocal %36 {approx = true} : vector<8x1xf32> -> vector<8x1xf32>
    %38 = vector.broadcast %37 : vector<8x1xf32> to vector<8x8xf32>
    %39 = arith.mulf %34, %38 : vector<8x8xf32>
    %cst_26 = arith.constant dense<0.000000e+00> : vector<8x16xf32>
    %40 = tpu.matmul %39, %9, %cst_26 {dimension_numbers = #tpu.dot_dimension_numbers<[1], [0], [0], [1], [0, 0, 1, 1], [], []>} : vector<8x8xf32>, vector<8x16xf32>, vector<8x16xf32> -> vector<8x16xf32>
    %c0_27 = arith.constant 0 : index
    %c0_28 = arith.constant 0 : index
    %41 = vector.load %arg10[%c0_27, %c0_28] : memref<8x32xf32, #tpu.memory_space<vmem>>, vector<8x32xf32>
    %c0_29 = arith.constant 0 : index
    %c0_30 = arith.constant 0 : index
    %c0_31 = arith.constant 0 : index
    %42 = vector.load %arg9[%c0_29, %c0_30, %c0_31] : memref<1x16x32xf32, #tpu.memory_space<vmem>>, vector<1x16x32xf32>
    %43 = vector.shape_cast %42 : vector<1x16x32xf32> to vector<16x32xf32>
    %cst_32 = arith.constant dense<0.000000e+00> : vector<8x32xf32>
    %44 = tpu.matmul %40, %43, %cst_32 {dimension_numbers = #tpu.dot_dimension_numbers<[1], [0], [0], [1], [0, 0, 1, 1], [], []>} : vector<8x16xf32>, vector<16x32xf32>, vector<8x32xf32> -> vector<8x32xf32>
    %45 = arith.addf %41, %44 : vector<8x32xf32>
    %c0_33 = arith.constant 0 : index
    %c0_34 = arith.constant 0 : index
    %46 = vector.load %arg10[%c0_33, %c0_34] : memref<8x32xf32, #tpu.memory_space<vmem>>, vector<8x32xf32>
    tpu.vector_store %arg10[%c0_33, %c0_34], %45 {strides = array<i32>} : memref<8x32xf32, #tpu.memory_space<vmem>>, vector<8x32xf32>,
    return
  }
  func.func @transform_0(%arg0: i32) -> (i32, i32) {
    %c0_i32 = arith.constant 0 : i32
    %c0_i32_0 = arith.constant 0 : i32
    %c0_i32_1 = arith.constant 0 : i32
    return %c0_i32, %c0_i32_0 : i32, i32
  }
  func.func @transform_1(%arg0: i32) -> (i32, i32) {
    %c0_i32 = arith.constant 0 : i32
    %c0_i32_0 = arith.constant 0 : i32
    %c0_i32_1 = arith.constant 0 : i32
    return %c0_i32, %c0_i32_0 : i32, i32
  }
  func.func @transform_2(%arg0: i32) -> (i32, i32) {
    %c0_i32 = arith.constant 0 : i32
    %c0_i32_0 = arith.constant 0 : i32
    %c0_i32_1 = arith.constant 0 : i32
    return %c0_i32, %c0_i32_0 : i32, i32
  }
  func.func @transform_3(%arg0: i32) -> (i32, i32) {
    %c0_i32 = arith.constant 0 : i32
    %c0_i32_0 = arith.constant 0 : i32
    %c0_i32_1 = arith.constant 0 : i32
    return %c0_i32, %c0_i32_0 : i32, i32
  }
  func.func @transform_4(%arg0: i32) -> (i32, i32) {
    %c0_i32 = arith.constant 0 : i32
    %c0_i32_0 = arith.constant 0 : i32
    %c0_i32_1 = arith.constant 0 : i32
    return %c0_i32, %c0_i32_0 : i32, i32
  }
  func.func @transform_5(%arg0: i32) -> (i32, i32, i32) {
    %c0_i32 = arith.constant 0 : i32
    %c0_i32_0 = arith.constant 0 : i32
    %c0_i32_1 = arith.constant 0 : i32
    return %arg0, %c0_i32, %c0_i32_0 : i32, i32, i32
  }
  func.func @transform_6(%arg0: i32) -> (i32, i32, i32) {
    %c0_i32 = arith.constant 0 : i32
    %c0_i32_0 = arith.constant 0 : i32
    %c0_i32_1 = arith.constant 0 : i32
    return %arg0, %c0_i32, %c0_i32_0 : i32, i32, i32
  }
  func.func @transform_7(%arg0: i32) -> (i32, i32, i32) {
    %c0_i32 = arith.constant 0 : i32
    %c0_i32_0 = arith.constant 0 : i32
    %c0_i32_1 = arith.constant 0 : i32
    return %arg0, %c0_i32, %c0_i32_0 : i32, i32, i32
  }
  func.func @transform_8(%arg0: i32) -> (i32, i32, i32) {
    %c0_i32 = arith.constant 0 : i32
    %c0_i32_0 = arith.constant 0 : i32
    %c0_i32_1 = arith.constant 0 : i32
    return %arg0, %c0_i32, %c0_i32_0 : i32, i32, i32
  }
  func.func @transform_9(%arg0: i32) -> (i32, i32) {
    %c0_i32 = arith.constant 0 : i32
    %c0_i32_0 = arith.constant 0 : i32
    %c0_i32_1 = arith.constant 0 : i32
    return %c0_i32, %c0_i32_0 : i32, i32
  }
}

</mosaic_0001>

<bundles_post_ra>
// kernel: tpu_custom_call.1
= control target key start
LH: loop header
LB: loop body
LE: loop exit
PB: predicated region body
PF: predicated region fallthrough
CT: control target
= control target key end

     0   :  { %14 = vsyncpa [#allocation3], 0  ;;  %s1265_s30 = smov 0   ;;  %s1379_s0 = inlined_call_operand.vmem [shape: f32[8,32], index: 0, kind: input, shape index: {}]   ;;  %s1380_s1 = inlined_call_operand.vmem [shape: f32[8,1], index: 1, kind: input, shape index: {}]   ;;  %s1381_s2 = inlined_call_operand.vmem [shape: f32[8,16], index: 2, kind: input, shape index: {}]   ;;  %s1382_s3 = inlined_call_operand.vmem [shape: f32[8,16], index: 3, kind: input, shape index: {}]   ;;  %s1383_s4 = inlined_call_operand.vmem [shape: f32[16,16], index: 4, kind: input, shape index: {}]   ;;  %s1384_s5 = inlined_call_operand.vmem [shape: f32[2,1,16], index: 5, kind: input, shape index: {}]   ;;  %s1385_s6 = inlined_call_operand.vmem [shape: f32[2,32,16], index: 6, kind: input, shape index: {}]   ;;  %s1386_s7 = inlined_call_operand.vmem [shape: f32[2,32,16], index: 7, kind: input, shape index: {}]   ;;  %s1387_s8 = inlined_call_operand.vmem [shape: f32[2,16,32], index: 8, kind: input, shape index: {}]   ;;  %s1388_s9 = inlined_call_operand.hbm [shape: f32[8,32], index: 9, kind: output, shape index: {}]  }
   0x1 LB: > { %s1271_s10 = sadd.s32 4294967295, %s1207_s30   ;;  %p1025_p0 = scmp.ge.s32.totalorder %s1207_s30, 1  ;;  %s1207_s30 = sphi %s1265_s30, %s20_s30  }
   0x2   : > { %p311_p1 = scmp.lt.s32.totalorder %s1207_s30, 3 }
   0x4   : > { %p312_p2 = pnand %p1025_p0, %p311_p1 }
   0x5   : > { %p355_p3 = scmp.lt.s32.totalorder (!%p312_p2), %s1271_s10, 1  ;;  %p1032_p4 = scmp.ne.s32.totalorder (!%p312_p2), %s1271_s10, 0 }
   0x6   : > { %315 = sbr.rel (%p312_p2) target bundleno = 1432 (0x598), region = 56 }
   0xd   : > { %s1277_s11 = scalar_select %p355_p3, %s1271_s10, 1 }
   0xe   : > { %376 = sbr.rel (%p1032_p4) target bundleno = 21 (0x15), region = 60  ;;  %vm377_vm0 = vcmask (!%p1032_p4), 261120   ;;  %v1209_v0 = vmov (!%p1032_p4), 0.0  }
   0xf   : > { %s357_s14 = scalar_lea.vmem %s1384_s5, %s1277_s11  ;;  %s1046_s15 = sshll.u32 %s1277_s11, 5  ;;  %378 = vst.msk [vmem:[#allocation2] sm:$0xff] (!%p1032_p4), %vm377_vm0, %v1209_v0 }
  0x10   : > { %s362_s18 = scalar_lea.vmem %s1385_s6, %s1046_s15  ;;  %s1290_s21 = scalar_lea.vmem %s1386_s7, %s1046_s15 }
  0x11   : > { %s1048_s22 = sshll.u32 %s1277_s11, 4 }
  0x12   : > { %s1296_s25 = scalar_lea.vmem %s1387_s8, %s1048_s22 }
  0x15 PF: > { %v532_v1 = vld [vmem:[%s1380_s1] sm:$0xff]  ;;  %v381_v3 = vld [vmem:[%s362_s18 + $0x8] sm:$0xff]  ;;  %v1210_v4 = vmov 0   ;;  %v1211_v5 = vmov 0.0|0.0   ;;  %v382_v7 = vld [vmem:[%s362_s18 + $0x10] sm:$0xff]  ;;  %vm1212_vm1 = vmmov 0  }
  0x16   : > { %v380_v2 = vld [vmem:[%s362_s18] sm:$0xff]  ;;  %1166 = vset.pattern.permute.xlu0 %v1210_v4  ;;  %1125 = vmatprep.subr.bf16.mxu0 %v1211_v5  ;;  %v383_v8 = vld [vmem:[%s362_s18 + $0x18] sm:$0xff]  ;;  %v1213_v9 = vmov 0.0   ;;  %v549_v12 = vld [vmem:[%s1383_s4 + $0x8] sm:$0xff]  ;;  %vm384_vm2 = vcmask 261120   ;;  %vm551_vm3 = vcmask 130048  }
  0x17   : > { %v1126_v6 = vpack.c.bf16 %v381_v3, %v380_v2  ;;  %536 = vperm.xlu0 %1166, %v532_v1   ;;  %1080 = vmatprep.mubr.msk.f32.mxu0 %vm1212_vm1, %v1213_v9  ;;  %v1129_v10 = vpack.c.bf16 %v383_v8, %v382_v7  ;;  %v548_v11 = vld [vmem:[%s1383_s4] sm:$0xff]  ;;  %v459_v14 = vld [vmem:[%s1290_s21 + $0x8] sm:$0xff]  ;;  %v460_v16 = vld [vmem:[%s1290_s21 + $0x10] sm:$0xff]  ;;  %vm780_vm4 = vcmask 64512   ;;  %p1150_p5 = scmp.eq.s32.totalorder %s1271_s10, 1 }
  0x18   : > { %1131 = vmatprep.subr.bf16.mxu1 %v1211_v5  ;;  %v458_v13 = vld [vmem:[%s1290_s21] sm:$0xff]  ;;  %1091 = vmatprep.mubr.msk.f32.mxu1 %vm1212_vm1, %v1213_v9  ;;  %v461_v17 = vld [vmem:[%s1290_s21 + $0x18] sm:$0xff]  ;;  %v1138_v19 = vpack.c.bf16 %v549_v12, %v548_v11  ;;  %v867_v50 = vld [vmem:[%s1296_s25 + $0x8] sm:$0xff]  ;;  %s1214_s21 = smov [#allocation2]  }
  0x19   : > { %1127 = vmatpush3.bf16.msra.mxu0 %v1126_v6  ;;  %v1132_v15 = vpack.c.bf16 %v459_v14, %v458_v13  ;;  %v379_v18 = vld [vmem:[%s1379_s0] sm:$0xff]  ;;  %v1135_v20 = vpack.c.bf16 %v461_v17, %v460_v16  ;;  %s950_s22 = sshll.u32 %s1214_s21, 4  ;;  %s951_s22 = int_to_ptr.vmem [resolvable:$true] %s950_s22 }
  0x1a   : > { %1128 = vmatprep.subr.bf16.mxu0 %v1211_v5  ;;  %v1035_v21 = vld [vmem:[%s357_s14] ss:$0 sm:$0xff]  ;;  %s1171_s23 = scalar_lea.vmem %s951_s22, 128  ;;  %p1178_p9 = scmp.lt.s32.totalorder %s951_s22, %s951_s22 }
  0x1b   : > { %1133 = vmatpush3.bf16.msra.mxu1 %v1132_v15  ;;  %v547_v28 = vld [vmem:[%s1382_s3] sm:$0xff]  ;;  %p1172_p6 = scmp.ne.s32.totalorder %s951_s22, %s1171_s23  ;;  %p1179_p10 = scmp.lt.s32.totalorder %s1171_s23, %s1171_s23 }
  0x1c   : > { %1134 = vmatprep.subr.bf16.mxu1 %v1211_v5  ;;  %v546_v29 = vld [vmem:[%s1381_s2] sm:$0xff] }
  0x1d   : > { %1130 = vmatpush3.bf16.msra.mxu0 %v1129_v10  ;;  %v866_v49 = vld [vmem:[%s1296_s25] sm:$0xff]  ;;  %p1173_p7 = pnand %p1172_p6, %p1150_p5  ;;  %p1180_p11 = por %p1179_p10, %p1178_p9 }
  0x1e   : > { %1137 = vmatprep.subr.bf16.mxu0 %v1211_v5  ;;  %v1144_v51 = vpack.c.bf16 %v867_v50, %v866_v49  ;;  %v865_v57 = vld [vmem:[#allocation2] sm:$0xff] }
  0x1f   : > { %1136 = vmatpush3.bf16.msra.mxu1 %v1135_v20  ;;  %p1174_p8 = pneg %p1173_p7 }
  0x20   : > { %1081 = vmatmul.mubr.msk.f32.vlgmr.msra.gmra.mrb[0].mxu0 %vm384_vm2, %v379_v18  ;;  %1140 = vmatprep.subr.bf16.mxu1 %v1211_v5 }
  0x21   : > { %1139 = vmatpush3.bf16.msra.mxu0 %v1138_v19  ;;  %1098 = vmatprep.mubr.msk.f32.mxu0 %vm1212_vm1, %v1213_v9  ;;  %p1181_p12 = pnand %p1180_p11, %p1174_p8 }
  0x22   : > { %1108 = vmatprep.subr.mxu0 %v1213_v9  ;;  %1092 = vmatmul.mubr.msk.f32.vlgmr.msra.gmra.mrb[0].mxu1 %vm384_vm2, %v379_v18 }
  0x23   : > { %1142 = vmatpush3.bf16.msra.mxu1 %v1138_v19  ;;  %1105 = vmatprep.mubr.msk.f32.mxu1 %vm1212_vm1, %v1213_v9 }
  0x24   : > { %1113 = vmatprep.subr.mxu1 %v1213_v9 }
  0x96   : > { %v537_v22 = vpop.permute.xlu0 %536 }
  0x97   : > { %v545_v23 = vmul.f32 %v1035_v21, %v537_v22 }
  0x99   : > { %1099 = vmatmul.mubr.msk.f32.vlgmr.msra.gmra.mrb[2].mxu0 %vm551_vm3, %v545_v23  ;;  %v550_v31 = vmul.f32 %v546_v29, %v545_v23 }
  0x9a   : > { %1110 = vmatprep.mubr.msk.f32.mxu0 %vm1212_vm1, %v1213_v9 }
  0xf3   : > { %v454_v24 = vpop.f32.mrb[0].mxu0 }
  0xf4   : > { %v1082_v25 = vpop.f32.mrb[1].mxu0  ;;  %1106 = vmatmul.mubr.msk.f32.vlgmr.msra.gmra.mrb[2].mxu1 %vm551_vm3, %v454_v24  ;;  %v627_v36 = vmul.f32 %v546_v29, %v454_v24 }
  0xf5   : > { %1115 = vmatprep.mubr.msk.f32.mxu1 %vm1212_vm1, %v1213_v9  ;;  %v528_v26 = vpop.f32.mrb[0].mxu1 }
  0xf6   : > { %v1093_v27 = vpop.f32.mrb[1].mxu1  ;;  %1114 = vmatpush3.msra.mxu1 %v528_v26 }
 0x16c   : > { %v621_v30 = vpop.f32.mrb[2].mxu0 }
 0x16d   : > { %v625_v32 = vmul.f32 %v621_v30, %v547_v28  ;;  %v1100_v33 = vpop.f32.mrb[3].mxu0 }
 0x16f   : > { %v626_v34 = vadd.f32 %v625_v32, %v550_v31 }
 0x1c7   : > { %v697_v35 = vpop.f32.mrb[2].mxu1 }
 0x1c8   : > { %v701_v37 = vmul.f32 %v697_v35, %v547_v28  ;;  %v1107_v38 = vpop.f32.mrb[3].mxu1 }
 0x1ca   : > { %v702_v39 = vadd.f32 %v701_v37, %v627_v36 }
 0x1cc   : > { %1109 = vmatpush3.xpose.msk.msra.mxu0 %vm551_vm3, %v702_v39 }
 0x1cd   : > { %1143 = vmatprep.subr.bf16.mxu0 %v1211_v5 }
 0x1cf   : > { %1111 = vmatmul.mubr.msk.f32.vlgmr.msra.gmra.mrb[4].mxu0 %vm551_vm3, %v626_v34 }
 0x1d0   : > { %1122 = vmatprep.mubr.msk.f32.mxu0 %vm1212_vm1, %v1213_v9  ;;  %1145 = vmatpush3.bf16.msra.mxu0 %v1144_v51 }
 0x2a2   : > { %v775_v40 = vpop.f32.mrb[4].mxu0 }
 0x2a3   : > { %v779_v41 = vmul.f32 0.25, %v775_v40  ;;  %v1112_v42 = vpop.f32.mrb[5].mxu0 }
 0x2a5   : > { %v781_v43 = vsel %vm780_vm4, %v779_v41, -inf }
 0x2a6   : > { %782 = vmax.xlane.f32.xlu0 %v781_v43 }
 0x333   : > { %v783_v44 = vpop.xlane.xlu0 %782 }
 0x334   : > { %v784_v45 = vsub.f32 %v779_v41, %v783_v44 }
 0x336   : > { %v785_v46 = vmul.f32 1.442695, %v784_v45 }
 0x338   : > { %1167 = vpow2.f32 %v785_v46 }
 0x342   : > { %v1168_v47 = vpop.eup %1167 }
 0x343   : > { %v787_v48 = vsel %vm780_vm4, %v1168_v47, 0.0 }
 0x344   : > { %788 = vadd.xlane.f32.xlu1 %v787_v48 }
 0x3d1   : > { %v789_v52 = vpop.xlane.xlu1 %788 }
 0x3d2   : > { %1169 = vrcp.f32 %v789_v52 }
 0x3dc   : > { %v1170_v53 = vpop.eup %1169 }
 0x3dd   : > { %v791_v54 = vmul.f32 %v1170_v53, %v1168_v47 }
 0x3df   : > { %1116 = vmatmul.mubr.msk.f32.vlgmr.msra.gmra.mrb[4].mxu1 %vm780_vm4, %v791_v54 }
 0x4b2   : > { %v861_v55 = vpop.f32.mrb[4].mxu1 }
 0x4b3   : > { %v1117_v56 = vpop.f32.mrb[5].mxu1  ;;  %1123 = vmatmul.mubr.msk.f32.vlgmr.msra.gmra.mrb[6].mxu0 %vm551_vm3, %v861_v55 }
 0x586   : > { %v937_v58 = vpop.f32.mrb[6].mxu0 }
 0x587   : > { %v941_v59 = vadd.f32 %v937_v58, %v865_v57  ;;  %v1124_v60 = vpop.f32.mrb[7].mxu0 }
 0x589   : > { %942 = vst.msk [vmem:[#allocation2] sm:$0xff] %vm384_vm2, %v941_v59 }
 0x58a   : > { %1184 = shalt.err (!%p1181_p12)
}
 0x58b   : > { %s1185_s26 = scalar_lea.hbm %s1388_s9, 128 }
 0x58c   : > { %p1186_p13 = scmp.ne.s32.totalorder %s1388_s9, %s1185_s26  ;;  %p1191_p2 = scmp.lt.u32.totalorder %s1185_s26, %s1388_s9 }
 0x58e   : > { %p1187_p0 = pnand %p1186_p13, %p1150_p5 }
 0x590   : > { %p1188_p1 = pneg %p1187_p0 }
 0x592   : > { %p1193_p3 = pnand %p1191_p2, %p1188_p1 }
 0x594   : > { %1196 = shalt.err (!%p1193_p3)
}
 0x595   : > { %1147 = dma.vmem_to_hbm [thread:$0]  (%p1150_p5), %s951_s22, 128, %s1388_s9, [#allocation3]  }
 0x596   : > { %1202 = dma.done.wait (%p1150_p5), [#allocation3], 128  }
 0x597   : > { %1204 = vsyncadd (%p1150_p5), [#allocation3], 4294967168 }
 0x598 PF: > { %s20_s30 = sadd.s32 1, %s1207_s30  }
 0x599   : > { %p17_p4 = scmp.ge.s32.totalorder %s20_s30, 4  }
 0x59b   :  { %19 = sbr.rel (!%p17_p4) target bundleno = 1 (0x1), region = 96 }
 0x5a2   :  { %963 = vsyncpa [#allocation3], 1 }
 0x5a3   :  { %965 = vsyncpa [#allocation3 + $0x1], 1 }

</bundles_post_ra>
